<compile_context>
chip_gen: v6e
topology: v6e:2x2x1
jax: 0.10.0
libtpu: 0.0.40
codegen_flags: <defaults>
</compile_context>

<pallas_src>
import jax
import jax.numpy as jnp
from jax.experimental import pallas as pl
from jax.experimental.pallas import tpu as pltpu

NUM_NODES = 207  # hard-coded expand size from the reference forward()


def _time_embed_kernel(x_ref, w_ref, b_ref, o_ref):
    # x_ref: (TM, d_inp), w_ref: (d_inp, d_model), b_ref: (1, d_model),
    # o_ref: (TM, d_model)
    d_inp = x_ref.shape[1]
    x = x_ref[...].astype(jnp.float32)
    w = w_ref[...].astype(jnp.float32)
    # Bias folded in as the accumulator init; unrolled VPU contraction over
    # the tiny K axis (K <= 6).  Each term is a rank-1 update broadcast over
    # lanes/sublanes -- pure VALU work, no MXU, no XLU.
    acc = jnp.broadcast_to(b_ref[...].astype(jnp.float32), o_ref.shape)
    for k in range(d_inp):  # static Python unroll (K is a compile-time const)
        acc = acc + x[:, k:k + 1] * w[k:k + 1, :]
    o_ref[...] = acc.astype(o_ref.dtype)


def time_feature_embedding(x, weight, bias, *, num_nodes=NUM_NODES, tm=1024):
    """x: (N, d_inp); weight: (d_inp, d_model); bias: (d_model,).

    Returns (1, N, num_nodes, d_model), matching the PyTorch module.
    """
    N, d_inp = x.shape
    d_model = weight.shape[1]
    bias2d = bias.reshape(1, d_model)

    # Row tile: full extent if small, otherwise an 8-aligned tile (sweepable).
    block_rows = N if N <= tm else tm
    grid = (pl.cdiv(N, block_rows),)

    out = pl.pallas_call(
        _time_embed_kernel,
        out_shape=jax.ShapeDtypeStruct((N, d_model), x.dtype),
        grid=grid,
        in_specs=[
            pl.BlockSpec((block_rows, d_inp), lambda i: (i, 0)),
            pl.BlockSpec((d_inp, d_model), lambda i: (0, 0)),   # resident
            pl.BlockSpec((1, d_model), lambda i: (0, 0)),       # resident
        ],
        out_specs=pl.BlockSpec((block_rows, d_model), lambda i: (i, 0)),
        compiler_params=pltpu.CompilerParams(
            dimension_semantics=("parallel",)),
    )(x, weight, bias2d)

    # torch.reshape + .expand is a zero-copy view; keep the 207-way
    # replication as a lazy broadcast outside the kernel so consumers under
    # jit fuse it rather than writing N*207*d_model floats to HBM.
    return jnp.broadcast_to(out.reshape(1, N, 1, d_model),
                            (1, N, num_nodes, d_model))


if __name__ == "__main__":
    # freq='t' -> d_inp = 5; d_model = 128 keeps the output store lane-dense.
    d_inp = 5
    d_model = 128
    N = 8  # number of time steps (rows of x)

    key = jax.random.PRNGKey(0)
    kx, kw, kb = jax.random.split(key, 3)

    x = jax.random.normal(kx, (N, d_inp), dtype=jnp.float32)
    bound = 1.0 / (d_inp ** 0.5)
    weight = jax.random.uniform(kw, (d_inp, d_model), dtype=jnp.float32,
                                minval=-bound, maxval=bound)
    bias = jax.random.uniform(kb, (d_model,), dtype=jnp.float32,
                              minval=-bound, maxval=bound)

    out = time_feature_embedding(x, weight, bias)
    out = jax.block_until_ready(out)

    # Sanity check against plain-JAX reference (linear + reshape + expand).
    ref = jnp.broadcast_to(
        (x @ weight + bias).reshape(1, N, 1, d_model),
        (1, N, NUM_NODES, d_model))
    assert out.shape == (1, N, NUM_NODES, d_model), out.shape
    assert jnp.allclose(out, ref, atol=1e-5, rtol=1e-5)

    print("KERNEL_OK")
</pallas_src>

<mosaic_0001>
module attributes {stable_mosaic.version = 11 : i64} {
  func.func @_time_embed_kernel(%arg0: i32, %arg1: memref<8x5xf32, #tpu.memory_space<vmem>>, %arg2: memref<5x128xf32, #tpu.memory_space<vmem>>, %arg3: memref<1x128xf32, #tpu.memory_space<vmem>>, %arg4: memref<8x128xf32, #tpu.memory_space<vmem>>) attributes {dimension_semantics = [#tpu.dimension_semantics<parallel>], iteration_bounds = array<i64: 1>, scalar_prefetch = 0 : i64, scratch_operands = 0 : i64, tpu.core_type = #tpu.core_type<tc>, window_params = [{transform_indices = @transform_0, window_bounds = array<i64: 8, 5>}, {pipeline_mode = #tpu.pipeline_mode<synchronous>, transform_indices = @transform_1, window_bounds = array<i64: 5, 128>}, {pipeline_mode = #tpu.pipeline_mode<synchronous>, transform_indices = @transform_2, window_bounds = array<i64: 1, 128>}, {transform_indices = @transform_3, window_bounds = array<i64: 8, 128>}]} {
    %c0 = arith.constant 0 : index
    %c0_0 = arith.constant 0 : index
    %0 = vector.load %arg1[%c0, %c0_0] : memref<8x5xf32, #tpu.memory_space<vmem>>, vector<8x5xf32>
    %c0_1 = arith.constant 0 : index
    %c0_2 = arith.constant 0 : index
    %1 = vector.load %arg2[%c0_1, %c0_2] : memref<5x128xf32, #tpu.memory_space<vmem>>, vector<5x128xf32>
    %c0_3 = arith.constant 0 : index
    %c0_4 = arith.constant 0 : index
    %2 = vector.load %arg3[%c0_3, %c0_4] : memref<1x128xf32, #tpu.memory_space<vmem>>, vector<1x128xf32>
    %3 = vector.shape_cast %2 : vector<1x128xf32> to vector<1x128xf32>
    %4 = vector.broadcast %3 : vector<1x128xf32> to vector<8x128xf32>
    %5 = vector.extract_strided_slice %0 {offsets = [0, 0], sizes = [8, 1], strides = [1, 1]} : vector<8x5xf32> to vector<8x1xf32>
    %6 = vector.extract_strided_slice %1 {offsets = [0, 0], sizes = [1, 128], strides = [1, 1]} : vector<5x128xf32> to vector<1x128xf32>
    %7 = vector.broadcast %5 : vector<8x1xf32> to vector<8x128xf32>
    %8 = vector.broadcast %6 : vector<1x128xf32> to vector<8x128xf32>
    %9 = arith.mulf %7, %8 : vector<8x128xf32>
    %10 = arith.addf %4, %9 : vector<8x128xf32>
    %11 = vector.extract_strided_slice %0 {offsets = [0, 1], sizes = [8, 1], strides = [1, 1]} : vector<8x5xf32> to vector<8x1xf32>
    %12 = vector.extract_strided_slice %1 {offsets = [1, 0], sizes = [1, 128], strides = [1, 1]} : vector<5x128xf32> to vector<1x128xf32>
    %13 = vector.broadcast %11 : vector<8x1xf32> to vector<8x128xf32>
    %14 = vector.broadcast %12 : vector<1x128xf32> to vector<8x128xf32>
    %15 = arith.mulf %13, %14 : vector<8x128xf32>
    %16 = arith.addf %10, %15 : vector<8x128xf32>
    %17 = vector.extract_strided_slice %0 {offsets = [0, 2], sizes = [8, 1], strides = [1, 1]} : vector<8x5xf32> to vector<8x1xf32>
    %18 = vector.extract_strided_slice %1 {offsets = [2, 0], sizes = [1, 128], strides = [1, 1]} : vector<5x128xf32> to vector<1x128xf32>
    %19 = vector.broadcast %17 : vector<8x1xf32> to vector<8x128xf32>
    %20 = vector.broadcast %18 : vector<1x128xf32> to vector<8x128xf32>
    %21 = arith.mulf %19, %20 : vector<8x128xf32>
    %22 = arith.addf %16, %21 : vector<8x128xf32>
    %23 = vector.extract_strided_slice %0 {offsets = [0, 3], sizes = [8, 1], strides = [1, 1]} : vector<8x5xf32> to vector<8x1xf32>
    %24 = vector.extract_strided_slice %1 {offsets = [3, 0], sizes = [1, 128], strides = [1, 1]} : vector<5x128xf32> to vector<1x128xf32>
    %25 = vector.broadcast %23 : vector<8x1xf32> to vector<8x128xf32>
    %26 = vector.broadcast %24 : vector<1x128xf32> to vector<8x128xf32>
    %27 = arith.mulf %25, %26 : vector<8x128xf32>
    %28 = arith.addf %22, %27 : vector<8x128xf32>
    %29 = vector.extract_strided_slice %0 {offsets = [0, 4], sizes = [8, 1], strides = [1, 1]} : vector<8x5xf32> to vector<8x1xf32>
    %30 = vector.extract_strided_slice %1 {offsets = [4, 0], sizes = [1, 128], strides = [1, 1]} : vector<5x128xf32> to vector<1x128xf32>
    %31 = vector.broadcast %29 : vector<8x1xf32> to vector<8x128xf32>
    %32 = vector.broadcast %30 : vector<1x128xf32> to vector<8x128xf32>
    %33 = arith.mulf %31, %32 : vector<8x128xf32>
    %34 = arith.addf %28, %33 : vector<8x128xf32>
    %c0_5 = arith.constant 0 : index
    %c0_6 = arith.constant 0 : index
    %35 = vector.load %arg4[%c0_5, %c0_6] : memref<8x128xf32, #tpu.memory_space<vmem>>, vector<8x128xf32>
    tpu.vector_store %arg4[%c0_5, %c0_6], %34 {strides = array<i32>} : memref<8x128xf32, #tpu.memory_space<vmem>>, vector<8x128xf32>,
    return
  }
  func.func @transform_0(%arg0: i32) -> (i32, i32) {
    %c0_i32 = arith.constant 0 : i32
    %c0_i32_0 = arith.constant 0 : i32
    return %arg0, %c0_i32 : i32, i32
  }
  func.func @transform_1(%arg0: i32) -> (i32, i32) {
    %c0_i32 = arith.constant 0 : i32
    %c0_i32_0 = arith.constant 0 : i32
    %c0_i32_1 = arith.constant 0 : i32
    return %c0_i32, %c0_i32_0 : i32, i32
  }
  func.func @transform_2(%arg0: i32) -> (i32, i32) {
    %c0_i32 = arith.constant 0 : i32
    %c0_i32_0 = arith.constant 0 : i32
    %c0_i32_1 = arith.constant 0 : i32
    return %c0_i32, %c0_i32_0 : i32, i32
  }
  func.func @transform_3(%arg0: i32) -> (i32, i32) {
    %c0_i32 = arith.constant 0 : i32
    %c0_i32_0 = arith.constant 0 : i32
    return %arg0, %c0_i32 : i32, i32
  }
}

</mosaic_0001>

<bundles_post_ra>
// kernel: tpu_custom_call.1
= control target key start
LH: loop header
LB: loop body
LE: loop exit
PB: predicated region body
PF: predicated region fallthrough
CT: control target
= control target key end

     0   :  { %8 = vsyncpa [#allocation3], 0  ;;  %s237_s0 = inlined_call_operand.hbm [shape: f32[8,5], index: 0, kind: input, shape index: {}]   ;;  %s238_s1 = inlined_call_operand.hbm [shape: f32[5,128], index: 1, kind: input, shape index: {}]   ;;  %s239_s2 = inlined_call_operand.vmem [shape: f32[1,128], index: 2, kind: input, shape index: {}]   ;;  %s240_s3 = inlined_call_operand.hbm [shape: f32[8,128], index: 3, kind: output, shape index: {}]  }
   0x1   :  { %9 = vsyncpa [#allocation6], 0 }
   0x2   :  { %10 = vsyncpa [#allocation4], 0  ;;  %s197_s12 = smov [#allocation2]   ;;  %s198_s14 = smov [#allocation5]  }
   0x3   :  { %s17_s13 = sshll.u32 %s197_s12, 4  ;;  %s27_s15 = sshll.u32 %s198_s14, 4  ;;  %s18_s13 = int_to_ptr.vmem [resolvable:$true] %s17_s13  ;;  %s28_s15 = int_to_ptr.vmem [resolvable:$true] %s27_s15 }
   0x4   :  { %s139_s16 = scalar_lea.vmem %s18_s13, 128  ;;  %p144_p1 = scmp.lt.s32.totalorder %s18_s13, %s18_s13 }
   0x5   :  { %p140_p0 = scmp.ne.s32.totalorder %s18_s13, %s139_s16  ;;  %p145_p2 = scmp.lt.s32.totalorder %s139_s16, %s139_s16 }
   0x7   :  { %p146_p3 = por %p145_p2, %p144_p1 }
   0x9   :  { %p147_p4 = pnand %p146_p3, %p140_p0 }
   0xb   :  { %150 = shalt.err (!%p147_p4)
}
   0xc   :  { %20 = dma.hbm_to_vmem [thread:$0]  %s237_s0, 128, %s18_s13, [#allocation3]  }
   0xd   :  { %s159_s19 = scalar_lea.vmem %s28_s15, 128  ;;  %p164_p6 = scmp.lt.s32.totalorder %s28_s15, %s28_s15 }
   0xe   :  { %p160_p5 = scmp.ne.s32.totalorder %s28_s15, %s159_s19  ;;  %p165_p7 = scmp.lt.s32.totalorder %s159_s19, %s159_s19 }
  0x10   :  { %p166_p8 = por %p165_p7, %p164_p6 }
  0x12   :  { %p167_p9 = pnand %p166_p8, %p160_p5 }
  0x14   :  { %170 = shalt.err (!%p167_p9)
}
  0x15   :  { %30 = dma.hbm_to_vmem [thread:$0]  %s238_s1, 128, %s28_s15, [#allocation6]  }
  0x16   :  { %191 = dma.done.wait [#allocation3], 128  }
  0x17   :  { %192 = vsyncadd [#allocation3], 4294967168 }
  0x18   :  { %193 = dma.done.wait [#allocation6], 128  }
  0x19   :  { %194 = vsyncadd [#allocation6], 4294967168  ;;  %v199_v0 = vmov 0   ;;  %v200_v1 = vmov 2   ;;  %v39_v2 = vld [vmem:[#allocation2] sm:$0xff]  ;;  %v201_v3 = vmov 1   ;;  %v53_v6 = vlaneseq }
  0x1a   :  { %125 = vset.pattern.permute.xlu0 %v199_v0  ;;  %127 = vset.pattern.permute.xlu1 %v200_v1  ;;  %v202_v4 = vmov 3   ;;  %v203_v5 = vmov 4   ;;  %v40_v9 = vld [vmem:[#allocation5] sm:$0x1f]  ;;  %v116_v18 = vld [vmem:[%s239_s2] ss:$0 sm:$0xff] }
  0x1b   :  { %50 = vperm.xlu0 %125, %v39_v2   ;;  %70 = vperm.xlu1 %127, %v39_v2   ;;  %v54_v7 = vshrl.u32 %v53_v6, 7  ;;  %s204_s22 = smov [#allocation7]  }
  0x1c   :  { %s106_s23 = sshll.u32 %s204_s22, 4  ;;  %s107_s23 = int_to_ptr.vmem [resolvable:$true] %s106_s23 }
  0x1d   :  { %v55_v8 = vsub.s32 0, %v54_v7  ;;  %v65_v11 = vsub.s32 1, %v54_v7  ;;  %v75_v13 = vsub.s32 2, %v54_v7  ;;  %v85_v17 = vsub.s32 3, %v54_v7  ;;  %s171_s2 = scalar_lea.vmem %s107_s23, 128  ;;  %p176_p11 = scmp.lt.s32.totalorder %s107_s23, %s107_s23 }
  0x1e   :  { %v95_v19 = vsub.s32 4, %v54_v7  ;;  %p172_p10 = scmp.ne.s32.totalorder %s107_s23, %s171_s2  ;;  %p177_p12 = scmp.lt.s32.totalorder %s171_s2, %s171_s2 }
  0x1f   :  { %126 = vset.pattern.permute.xlu0 %v201_v3  ;;  %128 = vset.pattern.permute.xlu1 %v202_v4  ;;  %v56_v10 = vrot.slane %v40_v9, %v55_v8  ;;  %v66_v16 = vrot.slane %v40_v9, %v65_v11  ;;  %v76_v20 = vrot.slane %v40_v9, %v75_v13 }
  0x20   :  { %60 = vperm.xlu0 %126, %v39_v2   ;;  %80 = vperm.xlu1 %128, %v39_v2   ;;  %v86_v25 = vrot.slane %v40_v9, %v85_v17  ;;  %v96_v26 = vrot.slane %v40_v9, %v95_v19  ;;  %p178_p13 = por %p177_p12, %p176_p11 }
  0x22   :  { %p179_p0 = pnand %p178_p13, %p172_p10 }
  0x24   :  { %129 = vset.pattern.permute.xlu1 %v203_v5  ;;  %130 = vset.pattern.permute.xlu0 %v203_v5 }
  0x25   :  { %90 = vperm.xlu1 %129, %v39_v2  }
  0x96   :  { %v51_v12 = vpop.permute.xlu0 %50  ;;  %v71_v14 = vpop.permute.xlu1 %70 }
  0x97   :  { %v57_v15 = vmul.f32 %v56_v10, %v51_v12  ;;  %v77_v27 = vmul.f32 %v76_v20, %v71_v14 }
  0x99   :  { %v58_v23 = vadd.f32 %v116_v18, %v57_v15 }
  0x9b   :  { %v61_v21 = vpop.permute.xlu0 %60  ;;  %v81_v22 = vpop.permute.xlu1 %80 }
  0x9c   :  { %v67_v24 = vmul.f32 %v66_v16, %v61_v21  ;;  %v87_v30 = vmul.f32 %v86_v25, %v81_v22 }
  0x9e   :  { %v68_v28 = vadd.f32 %v67_v24, %v58_v23 }
  0xa0   :  { %v78_v29 = vadd.f32 %v77_v27, %v68_v28  ;;  %v91_v31 = vpop.permute.xlu1 %90 }
  0xa1   :  { %v97_v32 = vmul.f32 %v96_v26, %v91_v31 }
  0xa2   :  { %v88_v33 = vadd.f32 %v87_v30, %v78_v29 }
  0xa4   :  { %v98_v34 = vadd.f32 %v97_v32, %v88_v33 }
  0xa6   :  { %99 = vst [vmem:[#allocation7] sm:$0xff] %v98_v34 }
  0xa7   :  { %182 = shalt.err (!%p179_p0)
}
  0xa8   :  { %109 = dma.vmem_to_hbm [thread:$0]  %s107_s23, 128, %s240_s3, [#allocation4]  }
  0xa9   :  { %195 = dma.done.wait [#allocation4], 128  }
  0xaa   :  { %196 = vsyncadd [#allocation4], 4294967168 }
  0xab   :  { %113 = vsyncpa [#allocation3], 1 }
  0xac   :  { %114 = vsyncpa [#allocation6], 1 }
  0xad   :  { %115 = vsyncpa [#allocation4], 1 }

</bundles_post_ra>
